<compile_context>
chip_gen: v6e
topology: v6e:2x2x1
jax: 0.10.0
libtpu: 0.0.40
codegen_flags: <defaults>
</compile_context>

<pallas_src>
import jax
import jax.numpy as jnp
from jax.experimental import pallas as pl
from jax.experimental.pallas import tpu as pltpu

K = 2        # Conv2d kernel_size = 2
STRIDE = 2   # canonical stacked-AE usage: stride == kernel_size == 2 (non-overlapping patches)
TM = 128     # lane-dense column tile (output / patch columns handled per grid step)


def cdae_fwd_kernel(p_ref, w_ref, b_ref, y_ref):
    # p_ref : (K*K*Cin, TM)   bf16  im2col patch columns (lane-dense chunk of the batch)
    # w_ref : (Cout, K*K*Cin) bf16  conv weights, reduction flattened as (cin, kh, kw)
    # b_ref : (Cout, 1)       f32   conv bias
    # y_ref : (Cout, TM)      f32   output columns (lane-dense store)
    acc = jnp.dot(w_ref[...], p_ref[...], preferred_element_type=jnp.float32)  # single MXU push
    y_ref[...] = jnp.maximum(acc + b_ref[...], 0.0).astype(y_ref.dtype)        # bias + ReLU


@jax.jit
def cdae_forward(x_nchw, w_oihw, bias, noise_key):
    """Eval-mode forward of CDAutoEncoder. Inputs in PyTorch layouts (NCHW / OIHW)."""
    N, Cin, H, W = x_nchw.shape
    Cout = w_oihw.shape[0]
    # The reshape-based im2col below requires stride == kernel_size == 2 and even H/W
    # (this also resolves the Ho/Wo formula mismatch flagged in review).
    assert H % STRIDE == 0 and W % STRIDE == 0, "CDAutoEncoder kernel expects even H and W"
    Ho, Wo = H // STRIDE, W // STRIDE

    # x_noisy = x * (Normal(0, 0.1) > -0.1).type_as(x)  -- same semantics as PyTorch.
    # Mask multiply stays in the wrapper (f32), fused by XLA with the im2col transpose pass,
    # so the kernel never DMAs the mask.
    noise = 0.1 * jax.random.normal(noise_key, x_nchw.shape, dtype=x_nchw.dtype)
    mask_nchw = (noise > -0.1).astype(x_nchw.dtype)
    xn = x_nchw * mask_nchw

    # im2col with the (n, oh, ow) index on the lane axis:
    #   P[(cin, kh, kw), (n, oh, ow)] = xn[n, cin, oh*2 + kh, ow*2 + kw]
    M = N * Ho * Wo
    KK = Cin * K * K
    patches = (xn.reshape(N, Cin, Ho, K, Wo, K)
                 .transpose(1, 3, 5, 0, 2, 4)
                 .reshape(KK, M))

    # Pad columns so every grid step stores a fully lane-dense (Cout, 128) block, and keep
    # >= 2 parallel grid steps so both v7x TensorCores get work even at tiny batch sizes.
    m_chunks = max(2, pl.cdiv(M, TM))
    Mp = m_chunks * TM
    patches = jnp.pad(patches, ((0, 0), (0, Mp - M))).astype(jnp.bfloat16)

    w2 = w_oihw.reshape(Cout, KK).astype(jnp.bfloat16)   # (Cout, Cin*K*K), matches patch order
    b2 = bias.astype(jnp.float32).reshape(Cout, 1)

    y2 = pl.pallas_call(
        cdae_fwd_kernel,
        out_shape=jax.ShapeDtypeStruct((Cout, Mp), jnp.float32),
        grid_spec=pltpu.PrefetchScalarGridSpec(
            num_scalar_prefetch=0,
            grid=(m_chunks,),
            in_specs=[
                pl.BlockSpec((KK, TM), lambda i: (0, i)),
                pl.BlockSpec((Cout, KK), lambda i: (0, 0)),
                pl.BlockSpec((Cout, 1), lambda i: (0, 0)),
            ],
            out_specs=pl.BlockSpec((Cout, TM), lambda i: (0, i)),
        ),
        compiler_params=pltpu.CompilerParams(dimension_semantics=("parallel",)),
    )(patches, w2, b2)

    # (Cout, N*Ho*Wo) -> PyTorch NCHW
    y = (y2[:, :M].reshape(Cout, N, Ho, Wo)
                  .transpose(1, 0, 2, 3)
                  .astype(x_nchw.dtype))
    return y, mask_nchw


def _reference(x_nchw, mask_nchw, w_oihw, bias):
    """Pure-JAX reference (lax conv) using the same bf16-rounded operands as the kernel."""
    xn = (x_nchw * mask_nchw).astype(jnp.bfloat16).astype(jnp.float32)
    w = w_oihw.astype(jnp.bfloat16).astype(jnp.float32)
    y = jax.lax.conv_general_dilated(
        xn, w, window_strides=(STRIDE, STRIDE), padding="VALID",
        dimension_numbers=("NCHW", "OIHW", "NCHW"))
    y = y + bias.reshape(1, -1, 1, 1)
    return jnp.maximum(y, 0.0)


if __name__ == "__main__":
    N, Cin, H, W = 2, 4, 16, 16
    Cout = 8

    key = jax.random.PRNGKey(0)
    k_x, k_w, k_b, k_noise = jax.random.split(key, 4)

    x = jax.random.normal(k_x, (N, Cin, H, W), dtype=jnp.float32)

    # Deterministic parameter init (PyTorch Conv2d-style uniform(-1/sqrt(fan_in), ...))
    fan_in = Cin * K * K
    bound = 1.0 / (fan_in ** 0.5)
    w = jax.random.uniform(k_w, (Cout, Cin, K, K), jnp.float32, -bound, bound)
    b = jax.random.uniform(k_b, (Cout,), jnp.float32, -bound, bound)

    y, mask = cdae_forward(x, w, b, k_noise)
    y = jax.block_until_ready(y)

    y_ref = _reference(x, mask, w, b)
    assert y.shape == (N, Cout, H // STRIDE, W // STRIDE), y.shape
    assert jnp.allclose(y, y_ref, atol=1e-3, rtol=1e-3), \
        float(jnp.max(jnp.abs(y - y_ref)))

    print("KERNEL_OK")
</pallas_src>

<mosaic_0001>
module attributes {stable_mosaic.version = 11 : i64} {
  func.func @cdae_fwd_kernel(%arg0: i32, %arg1: memref<16x128xbf16, #tpu.memory_space<vmem>>, %arg2: memref<8x16xbf16, #tpu.memory_space<vmem>>, %arg3: memref<8x1xf32, #tpu.memory_space<vmem>>, %arg4: memref<8x128xf32, #tpu.memory_space<vmem>>) attributes {dimension_semantics = [#tpu.dimension_semantics<parallel>], iteration_bounds = array<i64: 2>, scalar_prefetch = 0 : i64, scratch_operands = 0 : i64, tpu.core_type = #tpu.core_type<tc>, window_params = [{transform_indices = @transform_0, window_bounds = array<i64: 16, 128>}, {pipeline_mode = #tpu.pipeline_mode<synchronous>, transform_indices = @transform_1, window_bounds = array<i64: 8, 16>}, {pipeline_mode = #tpu.pipeline_mode<synchronous>, transform_indices = @transform_2, window_bounds = array<i64: 8, 1>}, {transform_indices = @transform_3, window_bounds = array<i64: 8, 128>}]} {
    %c0 = arith.constant 0 : index
    %c0_0 = arith.constant 0 : index
    %0 = vector.load %arg2[%c0, %c0_0] : memref<8x16xbf16, #tpu.memory_space<vmem>>, vector<8x16xbf16>
    %c0_1 = arith.constant 0 : index
    %c0_2 = arith.constant 0 : index
    %1 = vector.load %arg1[%c0_1, %c0_2] : memref<16x128xbf16, #tpu.memory_space<vmem>>, vector<16x128xbf16>
    %cst = arith.constant dense<0.000000e+00> : vector<8x128xf32>
    %2 = tpu.matmul %0, %1, %cst {dimension_numbers = #tpu.dot_dimension_numbers<[1], [0], [0], [1], [0, 0, 1, 1], [], []>} : vector<8x16xbf16>, vector<16x128xbf16>, vector<8x128xf32> -> vector<8x128xf32>
    %c0_3 = arith.constant 0 : index
    %c0_4 = arith.constant 0 : index
    %3 = vector.load %arg3[%c0_3, %c0_4] : memref<8x1xf32, #tpu.memory_space<vmem>>, vector<8x1xf32>
    %4 = vector.broadcast %3 : vector<8x1xf32> to vector<8x128xf32>
    %5 = arith.addf %2, %4 : vector<8x128xf32>
    %cst_5 = arith.constant 0.000000e+00 : f32
    %6 = vector.broadcast %cst_5 : f32 to vector<8x128xf32>
    %7 = arith.maximumf %5, %6 : vector<8x128xf32>
    %c0_6 = arith.constant 0 : index
    %c0_7 = arith.constant 0 : index
    %8 = vector.load %arg4[%c0_6, %c0_7] : memref<8x128xf32, #tpu.memory_space<vmem>>, vector<8x128xf32>
    tpu.vector_store %arg4[%c0_6, %c0_7], %7 {strides = array<i32>} : memref<8x128xf32, #tpu.memory_space<vmem>>, vector<8x128xf32>,
    return
  }
  func.func @transform_0(%arg0: i32) -> (i32, i32) {
    %c0_i32 = arith.constant 0 : i32
    %c0_i32_0 = arith.constant 0 : i32
    return %c0_i32, %arg0 : i32, i32
  }
  func.func @transform_1(%arg0: i32) -> (i32, i32) {
    %c0_i32 = arith.constant 0 : i32
    %c0_i32_0 = arith.constant 0 : i32
    %c0_i32_1 = arith.constant 0 : i32
    return %c0_i32, %c0_i32_0 : i32, i32
  }
  func.func @transform_2(%arg0: i32) -> (i32, i32) {
    %c0_i32 = arith.constant 0 : i32
    %c0_i32_0 = arith.constant 0 : i32
    %c0_i32_1 = arith.constant 0 : i32
    return %c0_i32, %c0_i32_0 : i32, i32
  }
  func.func @transform_3(%arg0: i32) -> (i32, i32) {
    %c0_i32 = arith.constant 0 : i32
    %c0_i32_0 = arith.constant 0 : i32
    return %c0_i32, %arg0 : i32, i32
  }
}

</mosaic_0001>

<bundles_post_ra>
// kernel: cdae_forward.1
= control target key start
LH: loop header
LB: loop body
LE: loop exit
PB: predicated region body
PF: predicated region fallthrough
CT: control target
= control target key end

     0   :  { %s434_s12 = smov 0   ;;  %s436_s13 = smov 0   ;;  %s494_s0 = inlined_call_operand.vmem [shape: bf16[16,256], index: 0, kind: input, shape index: {}]   ;;  %s495_s1 = inlined_call_operand.vmem [shape: bf16[8,16], index: 1, kind: input, shape index: {}]   ;;  %s496_s2 = inlined_call_operand.vmem [shape: f32[8,1], index: 2, kind: input, shape index: {}]   ;;  %s497_s3 = inlined_call_operand.vmem [shape: f32[8,256], index: 3, kind: output, shape index: {}]  }
   0x1   :  { %s438_s14 = smov 0  }
   0x2 LB: > { %s337_s15 = sadd.s32 4294967295, %s409_s14   ;;  %s451_s16 = sadd.s32 1, %s409_s14   ;;  %s409_s14 = sphi %s438_s14, %s500_s14   ;;  %s405_s13 = sphi %s436_s13, %s499_s13   ;;  %s401_s12 = sphi %s434_s12, %s498_s12  }
   0x3   : > { %s17_s17 = ssub.s32 %s409_s14, %s451_s16  ;;  %s20_s18 = sadd.s32 1, %s405_s13 }
   0x4   : > { %p18_p0 = scmp.eq.s32.totalorder %s17_s17, 0  ;;  %p27_p1 = scmp.ne.s32.totalorder %s405_s13, %s401_s12 }
   0x5   : > { %p28_p2 = scmp.eq.s32.totalorder %s409_s14, 0  ;;  %p340_p4 = scmp.ge.s32.totalorder %s409_s14, 2 }
   0x6   : > { %s460_s19 = scalar_select %p18_p0, %s405_s13, %s20_s18  }
   0x7   : > { %p29_p3 = por %p28_p2, %p27_p1  ;;  %127 = sbr.rel (%p340_p4) target bundleno = 17 (0x11), region = 24 }
   0xc   : > { %130 = sbr.rel (!%p29_p3) target bundleno = 17 (0x11), region = 28  ;;  %s132_s20 = sand.u32 (%p29_p3), 1, %s405_s13  }
   0xd   : > { %s342_s21 = sshll.u32 (%p29_p3), %s409_s14, 2  ;;  %s341_s22 = sshll.u32 (%p29_p3), %s132_s20, 3 }
   0xe   : > { %s136_s25 = scalar_lea.vmem (%p29_p3), %s494_s0, %s342_s21  ;;  %s134_s26 = scalar_lea.vmem (%p29_p3), [#allocation2], %s341_s22 }
   0xf   : > { %v153_v0 = vld [vmem:[%s136_s25] sm:$0xf] (%p29_p3)  ;;  %v155_v1 = vld [vmem:[%s136_s25 + $0x8] sm:$0xf] (%p29_p3) }
  0x10   : > { %154 = vst [vmem:[%s134_s26] sm:$0xf] (%p29_p3), %v153_v0  ;;  %156 = vst [vmem:[%s134_s26 + $0x4] sm:$0xf] (%p29_p3), %v155_v1 }
  0x11 PF: > { %p343_p5 = scmp.ge.s32.totalorder %s409_s14, 1  ;;  %p183_p6 = scmp.lt.s32.totalorder %s409_s14, 3 }
  0x13   : > { %p184_p7 = pnand %p343_p5, %p183_p6 }
  0x14   : > { %s190_s27 = sand.u32 (!%p184_p7), 1, %s401_s12   ;;  %p212_p8 = scmp.lt.s32.totalorder (!%p184_p7), %s337_s15, 1 }
  0x15   : > { %187 = sbr.rel (%p184_p7) target bundleno = 230 (0xe6), region = 69  ;;  %s344_s28 = sshll.u32 (!%p184_p7), %s190_s27, 3 }
  0x16   : > { %s192_s4 = scalar_lea.vmem (!%p184_p7), [#allocation2], %s344_s28 }
  0x1a   : > { %v411_v2 = vmov 0.0   ;;  %vm412_vm0 = vmmov 0   ;;  %v220_v3 = vld [vmem:[%s496_s2] sm:$0xff]  ;;  %v413_v4 = vmov 0   ;;  %vm232_vm1 = vcmask 130048   ;;  %s502_s15 = smov (!%p212_p8, %s337_s15), 1 }
  0x1b   : > { %352 = vmatprep.subr.bf16.mxu0 %v411_v2  ;;  %354 = vmatprep.mubr.msk.bf16.mxu0 %vm412_vm0, %v411_v2  ;;  %v386_v5 = vld [vmem:[%s192_s4] sm:$0xff]   ;;  %s345_s7 = sshll.u32 %s502_s15, 3 }
  0x1c   : > { %385 = vset.pattern.permute.xlu0 %v413_v4  ;;  %353 = vmatpush3.bf16.msra.mxu0 %v386_v5  ;;  %v217_v6 = vld [vmem:[%s495_s1] sm:$0xf]  ;;  %s215_s10 = scalar_lea.vmem %s497_s3, %s345_s7 }
  0x1d   : > { %223 = vperm.xlu0 %385, %v220_v3  }
  0x1f   : > { %355 = vmatmul.mubr.msk.bf16.vlgmr.msra.gmra.mxu0 %vm232_vm1, %v217_v6 }
  0x98   : > { %v224_v7 = vpop.permute.xlu0 %223 }
  0xdf   : > { %v270_v8 = vpop.f32.mrf.mxu0 }
  0xe0   : > { %v271_v9 = vadd.f32 %v270_v8, %v224_v7 }
  0xe1   : > { %v356_v10 = vpop.f32.mrf.mxu0 }
  0xe2   : > { %v276_v11 = vmax.f32 %v271_v9, 0.0 }
  0xe3   : > { %v273_v12 = vpop.f32.mrf.mxu0 }
  0xe4   : > { %277 = vst [vmem:[%s215_s10] sm:$0xff] %v276_v11 }
  0xe5   : > { %v357_v13 = vpop.f32.mrf.mxu0 }
  0xe6 PF: > { %p10_p9 = scmp.ge.s32.totalorder %s451_s16, 4   ;;  %s498_s12 = smov %s405_s13 }
  0xe7   : > { %s499_s13 = smov %s460_s19  ;;  %s500_s14 = smov %s451_s16 }
  0xe8   :  { %12 = sbr.rel (!%p10_p9) target bundleno = 2 (0x2), region = 108 }

</bundles_post_ra>
